<compile_context>
chip_gen: v7x
topology: tpu7x:2x2x1
jax: 0.10.0
libtpu: 0.0.40
codegen_flags: <defaults>
</compile_context>

<pallas_src>
import functools

import jax
import jax.numpy as jnp
from jax.experimental import pallas as pl
from jax.experimental.pallas import tpu as pltpu


def _round_up(x, m):
    return ((x + m - 1) // m) * m


def _pick_tile(n, cap, step):
    """Largest tile <= cap (multiple of `step`) dividing n; falls back to full n."""
    if n <= cap:
        return n
    t = (cap // step) * step
    while t >= step and n % t != 0:
        t -= step
    return t if t >= step else n


# ---------------------------------------------------------------------------
# Per-layer projection kernel: one fused lane-dense MXU matmul per node tile.
# ---------------------------------------------------------------------------
def gat_project_kernel(x_ref, w_ref, wh_ref, sd_ref, *, hf_pad):
    """proj = x @ W_fused; split into Wh (bf16) and [s|d] logits (f32).

    x_ref  : [TN, F_in_pad]      bf16
    w_ref  : [F_in_pad, WC]      bf16   WC = hf_pad + sd_pad
    wh_ref : [TN, hf_pad]        bf16   W x per head, head-major, zero-padded lanes
    sd_ref : [TN, sd_pad]        f32    cols [0:H] = a_src.Wx, [H:2H] = a_dst.Wx
    """
    proj = jnp.dot(x_ref[...], w_ref[...], preferred_element_type=jnp.float32)
    wh_ref[...] = proj[:, :hf_pad].astype(wh_ref.dtype)
    sd_ref[...] = proj[:, hf_pad:]


def gat_project(x_bf, w_fused_bf, *, hf_pad, sd_pad, tn):
    n, f_in_pad = x_bf.shape
    wc = w_fused_bf.shape[1]
    return pl.pallas_call(
        functools.partial(gat_project_kernel, hf_pad=hf_pad),
        out_shape=(jax.ShapeDtypeStruct((n, hf_pad), jnp.bfloat16),
                   jax.ShapeDtypeStruct((n, sd_pad), jnp.float32)),
        grid_spec=pltpu.PrefetchScalarGridSpec(
            num_scalar_prefetch=0,
            grid=(n // tn,),
            in_specs=[
                pl.BlockSpec((tn, f_in_pad), lambda i: (i, 0)),
                pl.BlockSpec((f_in_pad, wc), lambda i: (0, 0)),
            ],
            out_specs=(
                pl.BlockSpec((tn, hf_pad), lambda i: (i, 0)),
                pl.BlockSpec((tn, sd_pad), lambda i: (i, 0)),
            )),
        compiler_params=pltpu.CompilerParams(dimension_semantics=("parallel",)),
    )(x_bf, w_fused_bf)


# ---------------------------------------------------------------------------
# Flash-style attention / aggregation kernel over (query tile i, neighbor tile j).
# ---------------------------------------------------------------------------
def gat_attn_kernel(tmask_ref, s_ref, d_ref, wh_ref, b_ref, adj_ref, out_ref,
                    m_ref, l_ref, acc_ref, *,
                    heads, f_out, hf, out_width, negative_slope, apply_elu):
    """One GATConv layer with online softmax; empty adjacency tiles are skipped.

    tmask_ref : [NI, NJ]        int32 SMEM (scalar prefetch)  tile-has-edge table
    s_ref     : [TI, sd_pad]    f32    per-query  a_src . Wh_i  (cols 0:H)
    d_ref     : [TJ, sd_pad]    f32    per-neighbor a_dst . Wh_j (cols H:2H)
    wh_ref    : [TJ, hf_pad]    bf16   neighbor projections, head-major
    b_ref     : [1, out_width]  f32    bias (zero-padded)
    adj_ref   : [TI, TJ]        bf16   additive mask (0 = edge incl. self loop, -1e30 = none)
    out_ref   : [TI, out_width]        concat-of-heads output, written once at j == last
    scratch   : m [TI,H], l [TI,H], acc [TI, H*F_out]   (all f32, resident across j)
    """
    i = pl.program_id(0)
    j = pl.program_id(1)
    nj = pl.num_programs(1)

    @pl.when(j == 0)
    def _init():
        m_ref[...] = jnp.full_like(m_ref, -jnp.inf)
        l_ref[...] = jnp.zeros_like(l_ref)
        acc_ref[...] = jnp.zeros_like(acc_ref)

    @pl.when(tmask_ref[i, j] != 0)
    def _compute():
        s = s_ref[...][:, :heads]                                   # [TI, H] f32
        d_t = jnp.transpose(d_ref[...][:, heads:2 * heads])         # [H, TJ] f32 (one XLU xpose)
        wh_j = wh_ref[...][:, :hf]                                  # [TJ, H*F_out] bf16
        adj = adj_ref[...]                                          # [TI, TJ] bf16 (kept narrow)

        m_prev_all = m_ref[...]
        l_prev_all = l_ref[...]
        acc_prev = acc_ref[...]

        m_cols, l_cols, acc_cols = [], [], []
        for h in range(heads):  # static loop: [TI,TJ] softmax math + small PV matmul
            e = s[:, h:h + 1] + d_t[h:h + 1, :]                      # [TI, TJ] f32
            e = jnp.maximum(e, negative_slope * e)                   # LeakyReLU(0.2)
            e = e + adj                                              # bf16 mask upcasts here

            m_prev = m_prev_all[:, h:h + 1]
            m_new = jnp.maximum(m_prev, jnp.max(e, axis=-1, keepdims=True))
            alpha = jnp.exp(m_prev - m_new)
            p = jnp.exp(e - m_new)                                   # [TI, TJ] f32

            l_cols.append(alpha * l_prev_all[:, h:h + 1]
                          + jnp.sum(p, axis=-1, keepdims=True))
            pv = jnp.dot(p.astype(jnp.bfloat16),
                         wh_j[:, h * f_out:(h + 1) * f_out],
                         preferred_element_type=jnp.float32)         # [TI, F_out]
            acc_cols.append(alpha * acc_prev[:, h * f_out:(h + 1) * f_out] + pv)
            m_cols.append(m_new)

        # Single wide store per stat / accumulator (no per-head narrow stores).
        m_ref[...] = jnp.concatenate(m_cols, axis=-1)
        l_ref[...] = jnp.concatenate(l_cols, axis=-1)
        acc_ref[...] = jnp.concatenate(acc_cols, axis=-1)

    @pl.when(j == nj - 1)
    def _finalize():
        inv_l = pl.reciprocal(l_ref[...], approx=True)               # [TI, H], EUP
        acc = acc_ref[...]
        pieces = [acc[:, h * f_out:(h + 1) * f_out] * inv_l[:, h:h + 1]
                  for h in range(heads)]
        if out_width > hf:
            pieces.append(jnp.zeros((acc.shape[0], out_width - hf), jnp.float32))
        result = jnp.concatenate(pieces, axis=-1) + b_ref[...]       # [TI, out_width]
        if apply_elu:  # F.elu fused into layer 1; padded lanes stay exactly 0
            result = jnp.where(result > 0.0,
                               result,
                               jnp.exp(jnp.minimum(result, 0.0)) - 1.0)
        out_ref[...] = result.astype(out_ref.dtype)                  # one lane-dense store


def gat_attention(tile_mask, sd, wh, adj_bias_bf, bias_pad, *,
                  heads, f_out, out_width, out_dtype, apply_elu, ti, tj):
    n, hf_pad = wh.shape
    sd_pad = sd.shape[1]
    hf = heads * f_out

    kernel = functools.partial(
        gat_attn_kernel, heads=heads, f_out=f_out, hf=hf,
        out_width=out_width, negative_slope=0.2, apply_elu=apply_elu)

    return pl.pallas_call(
        kernel,
        out_shape=jax.ShapeDtypeStruct((n, out_width), out_dtype),
        grid_spec=pltpu.PrefetchScalarGridSpec(
            num_scalar_prefetch=1,                                    # tile_mask -> SMEM
            grid=(n // ti, n // tj),
            in_specs=[
                pl.BlockSpec((ti, sd_pad), lambda i, j, tm: (i, 0)),  # s_i (query logits)
                pl.BlockSpec((tj, sd_pad), lambda i, j, tm: (j, 0)),  # d_j (neighbor logits)
                pl.BlockSpec((tj, hf_pad), lambda i, j, tm: (j, 0)),  # Wh_j
                pl.BlockSpec((1, out_width), lambda i, j, tm: (0, 0)),  # bias
                pl.BlockSpec((ti, tj), lambda i, j, tm: (i, j)),      # adj additive mask
            ],
            out_specs=pl.BlockSpec((ti, out_width), lambda i, j, tm: (i, 0)),
            scratch_shapes=[
                pltpu.VMEM((ti, heads), jnp.float32),   # running max m
                pltpu.VMEM((ti, heads), jnp.float32),   # running sum l
                pltpu.VMEM((ti, hf), jnp.float32),      # output accumulator
            ]),
        compiler_params=pltpu.CompilerParams(
            dimension_semantics=("parallel", "arbitrary")),
    )(tile_mask, sd, sd, wh, bias_pad, adj_bias_bf)


# ---------------------------------------------------------------------------
# Parameter plumbing.
# ---------------------------------------------------------------------------
def fuse_gat_weights(w, a_src, a_dst, bias, *, f_in_pad):
    """Build the fused, padded weight matrix + padded bias for one GATConv layer.

    w: [H, F_in, F_out]; a_src/a_dst: [H, 1, F_out]; bias: [H*F_out]
    Column layout of W_fused: [ W_all (H*F_out) | 0-pad to hf_pad | W@a_src (H) |
                                W@a_dst (H) | 0-pad to hf_pad+sd_pad ].
    """
    heads, f_in, f_out = w.shape
    hf = heads * f_out
    hf_pad = _round_up(hf, 128)
    sd_pad = _round_up(2 * heads, 128)

    w_all = jnp.transpose(w, (1, 0, 2)).reshape(f_in, hf)             # [F_in, H*F_out]
    wa_src = jnp.einsum('hif,hf->ih', w, a_src[:, 0, :])              # [F_in, H]
    wa_dst = jnp.einsum('hif,hf->ih', w, a_dst[:, 0, :])              # [F_in, H]

    w_fused = jnp.zeros((f_in_pad, hf_pad + sd_pad), jnp.float32)
    w_fused = w_fused.at[:f_in, :hf].set(w_all)
    w_fused = w_fused.at[:f_in, hf_pad:hf_pad + heads].set(wa_src)
    w_fused = w_fused.at[:f_in, hf_pad + heads:hf_pad + 2 * heads].set(wa_dst)

    bias_pad = jnp.zeros((1, hf_pad), jnp.float32).at[0, :hf].set(bias)
    return w_fused.astype(jnp.bfloat16), bias_pad, hf_pad, sd_pad


def init_gat_params(key, nfeat, nhid, output_dim, heads):
    """Deterministic glorot-style init matching GATConv parameter shapes."""
    ks = jax.random.split(key, 8)

    def glorot(k, shape, fan_in, fan_out):
        limit = jnp.sqrt(6.0 / (fan_in + fan_out))
        return jax.random.uniform(k, shape, jnp.float32, -limit, limit)

    return {
        # layer 1: in=nfeat, out=nhid, heads=heads, concat=True
        "w1": glorot(ks[0], (heads, nfeat, nhid), nfeat, heads * nhid),
        "a_src1": glorot(ks[1], (heads, 1, nhid), nhid, 1),
        "a_dst1": glorot(ks[2], (heads, 1, nhid), nhid, 1),
        "b1": jnp.zeros((heads * nhid,), jnp.float32),
        # layer 2: in=nhid*heads, out=output_dim, heads=1
        "w2": glorot(ks[3], (1, nhid * heads, output_dim), nhid * heads, output_dim),
        "a_src2": glorot(ks[4], (1, 1, output_dim), output_dim, 1),
        "a_dst2": glorot(ks[5], (1, 1, output_dim), output_dim, 1),
        "b2": jnp.zeros((output_dim,), jnp.float32),
    }


def gat_forward(params, x, adj, *, nhid, output_dim, heads):
    """x: [N, nfeat], adj: [N, N] dense adjacency (0/1). Returns [N, output_dim]."""
    n, nfeat = x.shape

    # Additive attention bias with self-loops (GATConv default), bf16 to halve adj DMA.
    edge = (adj + jnp.eye(n, dtype=adj.dtype)) > 0
    adj_bias = jnp.where(edge, 0.0, -1e30).astype(jnp.bfloat16)

    ti = _pick_tile(n, 128, 8)    # query-node tile (keep >=2 tiles to load both v7x TCs)
    tj = _pick_tile(n, 512, 128)  # neighbor-node tile (lane dim of adj: 128-multiple or full N)
    tn = _pick_tile(n, 256, 8)    # projection node tile

    # Per-tile "has any edge" table for block-sparse skipping (scalar prefetch -> SMEM).
    ni, njt = n // ti, n // tj
    tile_mask = edge.reshape(ni, ti, njt, tj).any(axis=(1, 3)).astype(jnp.int32)

    # ---- Layer 1: GATConv(nfeat, nhid, heads) fused with F.elu -------------
    f_in1 = _round_up(nfeat, 128)
    x_pad = jnp.zeros((n, f_in1), jnp.float32).at[:, :nfeat].set(x).astype(jnp.bfloat16)
    w1f, b1p, hf_pad1, sd_pad1 = fuse_gat_weights(
        params["w1"], params["a_src1"], params["a_dst1"], params["b1"], f_in_pad=f_in1)
    wh1, sd1 = gat_project(x_pad, w1f, hf_pad=hf_pad1, sd_pad=sd_pad1, tn=tn)
    h1 = gat_attention(tile_mask, sd1, wh1, adj_bias, b1p,
                       heads=heads, f_out=nhid, out_width=hf_pad1,
                       out_dtype=jnp.bfloat16, apply_elu=True,
                       ti=ti, tj=tj)                    # [N, hf_pad1] bf16, padded lanes = 0

    # ---- Layer 2: GATConv(nhid*heads, output_dim, heads=1) -----------------
    # h1 is consumed padded; layer-2 weights are row-padded with zeros (no slicing).
    w2f, b2p, hf_pad2, sd_pad2 = fuse_gat_weights(
        params["w2"], params["a_src2"], params["a_dst2"], params["b2"], f_in_pad=hf_pad1)
    wh2, sd2 = gat_project(h1, w2f, hf_pad=hf_pad2, sd_pad=sd_pad2, tn=tn)
    out = gat_attention(tile_mask, sd2, wh2, adj_bias, b2p,
                        heads=1, f_out=output_dim, out_width=hf_pad2,
                        out_dtype=jnp.float32, apply_elu=False,
                        ti=ti, tj=tj)                   # [N, hf_pad2] f32

    return out[:, :output_dim]


if __name__ == "__main__":
    # Small shapes: N=16 nodes, nfeat=16, nhid=8, heads=8, output_dim=4
    N, NFEAT, NHID, OUT_DIM, HEADS = 16, 16, 8, 4, 8

    key = jax.random.PRNGKey(0)
    k_x, k_adj, k_p = jax.random.split(key, 3)

    x = jax.random.normal(k_x, (N, NFEAT), jnp.float32)
    adj = jax.random.bernoulli(k_adj, 0.3, (N, N)).astype(jnp.float32)

    params = init_gat_params(k_p, NFEAT, NHID, OUT_DIM, HEADS)

    out = gat_forward(params, x, adj, nhid=NHID, output_dim=OUT_DIM, heads=HEADS)
    out = jax.block_until_ready(out)

    assert out.shape == (N, OUT_DIM), out.shape
    assert bool(jnp.all(jnp.isfinite(out)))
    print("KERNEL_OK")
</pallas_src>

<mosaic_0001>
module attributes {stable_mosaic.version = 11 : i64} {
  func.func @gat_project_kernel(%arg0: i32, %arg1: memref<16x128xbf16, #tpu.memory_space<vmem>>, %arg2: memref<128x256xbf16, #tpu.memory_space<vmem>>, %arg3: memref<16x128xbf16, #tpu.memory_space<vmem>>, %arg4: memref<16x128xf32, #tpu.memory_space<vmem>>) attributes {dimension_semantics = [#tpu.dimension_semantics<parallel>], iteration_bounds = array<i64: 1>, scalar_prefetch = 0 : i64, scratch_operands = 0 : i64, tpu.core_type = #tpu.core_type<tc>, window_params = [{transform_indices = @transform_0, window_bounds = array<i64: 16, 128>}, {pipeline_mode = #tpu.pipeline_mode<synchronous>, transform_indices = @transform_1, window_bounds = array<i64: 128, 256>}, {transform_indices = @transform_2, window_bounds = array<i64: 16, 128>}, {transform_indices = @transform_3, window_bounds = array<i64: 16, 128>}]} {
    %c0 = arith.constant 0 : index
    %c0_0 = arith.constant 0 : index
    %0 = vector.load %arg1[%c0, %c0_0] : memref<16x128xbf16, #tpu.memory_space<vmem>>, vector<16x128xbf16>
    %c0_1 = arith.constant 0 : index
    %c0_2 = arith.constant 0 : index
    %1 = vector.load %arg2[%c0_1, %c0_2] : memref<128x256xbf16, #tpu.memory_space<vmem>>, vector<128x256xbf16>
    %cst = arith.constant dense<0.000000e+00> : vector<16x256xf32>
    %2 = tpu.matmul %0, %1, %cst {dimension_numbers = #tpu.dot_dimension_numbers<[1], [0], [0], [1], [0, 0, 1, 1], [], []>} : vector<16x128xbf16>, vector<128x256xbf16>, vector<16x256xf32> -> vector<16x256xf32>
    %3 = vector.extract_strided_slice %2 {offsets = [0, 0], sizes = [16, 128], strides = [1, 1]} : vector<16x256xf32> to vector<16x128xf32>
    %4 = arith.truncf %3 : vector<16x128xf32> to vector<16x128xbf16>
    %c0_3 = arith.constant 0 : index
    %c0_4 = arith.constant 0 : index
    %5 = vector.load %arg3[%c0_3, %c0_4] : memref<16x128xbf16, #tpu.memory_space<vmem>>, vector<16x128xbf16>
    tpu.vector_store %arg3[%c0_3, %c0_4], %4 {strides = array<i32>} : memref<16x128xbf16, #tpu.memory_space<vmem>>, vector<16x128xbf16>,
    %6 = vector.extract_strided_slice %2 {offsets = [0, 128], sizes = [16, 128], strides = [1, 1]} : vector<16x256xf32> to vector<16x128xf32>
    %c0_5 = arith.constant 0 : index
    %c0_6 = arith.constant 0 : index
    %7 = vector.load %arg4[%c0_5, %c0_6] : memref<16x128xf32, #tpu.memory_space<vmem>>, vector<16x128xf32>
    tpu.vector_store %arg4[%c0_5, %c0_6], %6 {strides = array<i32>} : memref<16x128xf32, #tpu.memory_space<vmem>>, vector<16x128xf32>,
    return
  }
  func.func @transform_0(%arg0: i32) -> (i32, i32) {
    %c0_i32 = arith.constant 0 : i32
    %c0_i32_0 = arith.constant 0 : i32
    return %arg0, %c0_i32 : i32, i32
  }
  func.func @transform_1(%arg0: i32) -> (i32, i32) {
    %c0_i32 = arith.constant 0 : i32
    %c0_i32_0 = arith.constant 0 : i32
    %c0_i32_1 = arith.constant 0 : i32
    return %c0_i32, %c0_i32_0 : i32, i32
  }
  func.func @transform_2(%arg0: i32) -> (i32, i32) {
    %c0_i32 = arith.constant 0 : i32
    %c0_i32_0 = arith.constant 0 : i32
    return %arg0, %c0_i32 : i32, i32
  }
  func.func @transform_3(%arg0: i32) -> (i32, i32) {
    %c0_i32 = arith.constant 0 : i32
    %c0_i32_0 = arith.constant 0 : i32
    return %arg0, %c0_i32 : i32, i32
  }
}

</mosaic_0001>

<bundles_post_ra>
// kernel: tpu_custom_call.1
= control target key start
LH: loop header
LB: loop body
LE: loop exit
PB: predicated region body
PF: predicated region fallthrough
CT: control target
= control target key end

     0   :  { %9 = vsyncpa [#allocation3], 0  ;;  %s489_s0 = inlined_call_operand.hbm [shape: bf16[16,128], index: 0, kind: input, shape index: {}]   ;;  %s490_s1 = inlined_call_operand.hbm [shape: bf16[128,256], index: 1, kind: input, shape index: {}]   ;;  %s491_s2 = inlined_call_operand.hbm [shape: bf16[16,128], index: 2, kind: output, shape index: {0}]   ;;  %s492_s3 = inlined_call_operand.hbm [shape: f32[16,128], index: 3, kind: output, shape index: {1}]  }
   0x1   :  { %10 = vsyncpa [#allocation6], 0 }
   0x2   :  { %11 = vsyncpa [#allocation4], 0 }
   0x3   :  { %12 = vsyncpa [#allocation9], 0  ;;  %s393_s12 = smov [#allocation2]   ;;  %s297_s16 = scalar_lea.hbm %s489_s0, 128 }
   0x4   :  { %s18_s13 = sshll.u32 %s393_s12, 4  ;;  %p298_p0 = scmp.ne.s32.totalorder %s489_s0, %s297_s16  ;;  %s19_s13 = int_to_ptr.vmem [resolvable:$true] %s18_s13 }
   0x5   :  { %p301_p1 = scmp.lt.u32.totalorder %s297_s16, %s489_s0 }
   0x7   :  { %p303_p2 = pnand %p301_p1, %p298_p0 }
   0x9   :  { %306 = shalt.err (!%p303_p2)
}
   0xa   :  { %s307_s21 = scalar_lea.vmem %s19_s13, 128  ;;  %p312_p4 = scmp.lt.s32.totalorder %s19_s13, %s19_s13 }
   0xb   :  { %p308_p3 = scmp.ne.s32.totalorder %s19_s13, %s307_s21  ;;  %p313_p5 = scmp.lt.s32.totalorder %s307_s21, %s307_s21 }
   0xd   :  { %p314_p6 = por %p313_p5, %p312_p4 }
   0xf   :  { %p315_p7 = pnand %p314_p6, %p308_p3 }
  0x11   :  { %318 = shalt.err (!%p315_p7)
}
  0x12   :  { %s394_s22 = smov 64   ;;  %s395_s23 = smov 4  }
  0x13   :  { %24 = dma.hbm_to_vmem [thread:$0]  %s489_s0, 128, %s19_s13, [#allocation3], %s394_s22, %s394_s22, %s395_s23  }
  0x14   :  { %s396_s26 = smov [#allocation5]   ;;  %s319_s30 = scalar_lea.hbm %s490_s1, 2048 }
  0x15   :  { %s30_s27 = sshll.u32 %s396_s26, 4  ;;  %p320_p8 = scmp.ne.s32.totalorder %s490_s1, %s319_s30  ;;  %s31_s27 = int_to_ptr.vmem [resolvable:$true] %s30_s27 }
  0x16   :  { %p323_p9 = scmp.lt.u32.totalorder %s319_s30, %s490_s1 }
  0x18   :  { %p325_p10 = pnand %p323_p9, %p320_p8 }
  0x1a   :  { %328 = shalt.err (!%p325_p10)
}
  0x1b   :  { %s329_s8 = scalar_lea.vmem %s31_s27, 2048  ;;  %p334_p12 = scmp.lt.s32.totalorder %s31_s27, %s31_s27 }
  0x1c   :  { %p330_p11 = scmp.ne.s32.totalorder %s31_s27, %s329_s8  ;;  %p335_p13 = scmp.lt.s32.totalorder %s329_s8, %s329_s8 }
  0x1e   :  { %p336_p0 = por %p335_p13, %p334_p12 }
  0x20   :  { %p337_p1 = pnand %p336_p0, %p330_p11 }
  0x22   :  { %340 = shalt.err (!%p337_p1)
}
  0x23   :  { %s397_s0 = smov 128   ;;  %s398_s9 = smov 8  }
  0x24   :  { %36 = dma.hbm_to_vmem [thread:$0]  %s490_s1, 2048, %s31_s27, [#allocation6], %s397_s0, %s397_s0, %s398_s9  }
  0x25   :  { %385 = dma.done.wait [#allocation3], 128  }
  0x26   :  { %386 = vsyncadd [#allocation3], 4294967168 }
  0x27   :  { %387 = dma.done.wait [#allocation6], 2048  }
  0x28   :  { %388 = vsyncadd [#allocation6], 4294965248  ;;  %v399_v0 = vmov 0   ;;  %v272_v1 = vld [vmem:[#allocation5 + $0x4] ss:$8 sps:$4 sm:$0xff]   ;;  %v296_v17 = vld [vmem:[#allocation2] sm:$0xff]  }
  0x29   :  { %180 = vmatprep.mubr.bf16.mxu0 %v399_v0  ;;  %v274_v2 = vld [vmem:[#allocation5] ss:$8 sps:$4 sm:$0xff]   ;;  %148 = vmatprep.subr.bf16.mxu0 %v272_v1  ;;  %v275_v3 = vld [vmem:[#allocation5 + $0x14] ss:$8 sps:$4 sm:$0xff]   ;;  %v277_v4 = vld [vmem:[#allocation5 + $0x10] ss:$8 sps:$4 sm:$0xff]  }
  0x2a   :  { %149 = vmatpush1.bf16.msra.mxu0 %v274_v2  ;;  %v278_v5 = vld [vmem:[#allocation5 + $0x24] ss:$8 sps:$4 sm:$0xff]   ;;  %v280_v6 = vld [vmem:[#allocation5 + $0x20] ss:$8 sps:$4 sm:$0xff]   ;;  %v281_v7 = vld [vmem:[#allocation5 + $0x34] ss:$8 sps:$4 sm:$0xff]  }
  0x2b   :  { %150 = vmatprep.subr.bf16.mxu0 %v275_v3  ;;  %v283_v8 = vld [vmem:[#allocation5 + $0x30] ss:$8 sps:$4 sm:$0xff]   ;;  %v284_v9 = vld [vmem:[#allocation5 + $0x44] ss:$8 sps:$4 sm:$0xff]   ;;  %v286_v10 = vld [vmem:[#allocation5 + $0x40] ss:$8 sps:$4 sm:$0xff]  }
  0x2c   :  { %v287_v11 = vld [vmem:[#allocation5 + $0x54] ss:$8 sps:$4 sm:$0xff]   ;;  %v289_v12 = vld [vmem:[#allocation5 + $0x50] ss:$8 sps:$4 sm:$0xff]   ;;  %v290_v13 = vld [vmem:[#allocation5 + $0x64] ss:$8 sps:$4 sm:$0xff]  }
  0x2d   :  { %v292_v14 = vld [vmem:[#allocation5 + $0x60] ss:$8 sps:$4 sm:$0xff]   ;;  %v293_v15 = vld [vmem:[#allocation5 + $0x74] ss:$8 sps:$4 sm:$0xff]   ;;  %v295_v16 = vld [vmem:[#allocation5 + $0x70] ss:$8 sps:$4 sm:$0xff]  }
  0x2e   :  { %151 = vmatpush1.bf16.msra.mxu0 %v277_v4  ;;  %s400_s1 = smov [#allocation8]   ;;  %s401_s13 = smov [#allocation7]  }
  0x2f   :  { %152 = vmatprep.subr.bf16.mxu0 %v278_v5  ;;  %s220_s12 = sshll.u32 %s400_s1, 4  ;;  %s208_s14 = sshll.u32 %s401_s13, 4  ;;  %s221_s12 = int_to_ptr.vmem [resolvable:$true] %s220_s12  ;;  %s452_s14 = int_to_ptr.vmem [resolvable:$true] %s208_s14 }
  0x30   :  { %s341_s15 = scalar_lea.vmem %s221_s12, 256  ;;  %p346_p3 = scmp.lt.s32.totalorder %s221_s12, %s221_s12 }
  0x31   :  { %p342_p2 = scmp.ne.s32.totalorder %s221_s12, %s341_s15  ;;  %p347_p4 = scmp.lt.s32.totalorder %s341_s15, %s341_s15 }
  0x32   :  { %153 = vmatpush1.bf16.msra.mxu0 %v280_v6 }
  0x33   :  { %154 = vmatprep.subr.bf16.mxu0 %v281_v7  ;;  %p348_p5 = por %p347_p4, %p346_p3 }
  0x35   :  { %p349_p6 = pnand %p348_p5, %p342_p2 }
  0x36   :  { %155 = vmatpush1.bf16.msra.mxu0 %v283_v8 }
  0x37   :  { %156 = vmatprep.subr.bf16.mxu0 %v284_v9 }
  0x3a   :  { %157 = vmatpush1.bf16.msra.mxu0 %v286_v10 }
  0x3b   :  { %158 = vmatprep.subr.bf16.mxu0 %v287_v11 }
  0x3e   :  { %159 = vmatpush1.bf16.msra.mxu0 %v289_v12 }
  0x3f   :  { %160 = vmatprep.subr.bf16.mxu0 %v290_v13 }
  0x42   :  { %161 = vmatpush1.bf16.msra.mxu0 %v292_v14 }
  0x43   :  { %162 = vmatprep.subr.bf16.mxu0 %v293_v15 }
  0x46   :  { %163 = vmatpush1.bf16.msra.mxu0 %v295_v16 }
  0x49   :  { %181 = vmatmul.mubr.bf16.vlgmr.msra.gmra.mrb[0].mxu0 %v296_v17 }
 0x11c   :  { %v182_v18 = vpop.f32.mrb[0].mxu0 }
 0x11d   :  { %v184_v19 = vpop.f32.mrb[1].mxu0 }
 0x11e   :  { %201 = vst [vmem:[#allocation8] sm:$0xff] %v184_v19  ;;  %v186_v20 = vpop.f32.mrb[2].mxu0 }
 0x11f   :  { %v261_v21 = vpack.c.bf16 %v186_v20, %v182_v18  ;;  %v188_v22 = vpop.f32.mrb[3].mxu0 }
 0x120   :  { %202 = vst [vmem:[#allocation8 + $0x8] sm:$0xff] %v188_v22 }
 0x121   :  { %262 = vst [vmem:[#allocation7] sm:$0xff] %v261_v21  }
 0x122   :  { %352 = shalt.err (!%p349_p6)
}
 0x123   :  { %s353_s18 = scalar_lea.hbm %s492_s3, 256 }
 0x124   :  { %p354_p7 = scmp.ne.s32.totalorder %s492_s3, %s353_s18  ;;  %p357_p8 = scmp.lt.u32.totalorder %s353_s18, %s492_s3 }
 0x126   :  { %p359_p9 = pnand %p357_p8, %p354_p7 }
 0x128   :  { %362 = shalt.err (!%p359_p9)
}
 0x129   :  { %226 = dma.vmem_to_hbm [thread:$0]  %s221_s12, 256, %s492_s3, [#allocation9], %s397_s0, %s397_s0, %s398_s9  }
 0x12a   :  { %s363_s27 = scalar_lea.vmem %s452_s14, 128  ;;  %p368_p11 = scmp.lt.s32.totalorder %s452_s14, %s452_s14 }
 0x12b   :  { %p364_p10 = scmp.ne.s32.totalorder %s452_s14, %s363_s27  ;;  %p369_p12 = scmp.lt.s32.totalorder %s363_s27, %s363_s27 }
 0x12d   :  { %p370_p13 = por %p369_p12, %p368_p11 }
 0x12f   :  { %p371_p0 = pnand %p370_p13, %p364_p10 }
 0x131   :  { %374 = shalt.err (!%p371_p0)
}
 0x132   :  { %s375_s30 = scalar_lea.hbm %s491_s2, 128 }
 0x133   :  { %p376_p1 = scmp.ne.s32.totalorder %s491_s2, %s375_s30  ;;  %p379_p2 = scmp.lt.u32.totalorder %s375_s30, %s491_s2 }
 0x135   :  { %p381_p3 = pnand %p379_p2, %p376_p1 }
 0x137   :  { %384 = shalt.err (!%p381_p3)
}
 0x138   :  { %214 = dma.vmem_to_hbm [thread:$0]  %s452_s14, 128, %s491_s2, [#allocation4], %s394_s22, %s394_s22, %s395_s23  }
 0x139   :  { %389 = dma.done.wait [#allocation4], 128  }
 0x13a   :  { %390 = vsyncadd [#allocation4], 4294967168 }
 0x13b   :  { %391 = dma.done.wait [#allocation9], 256  }
 0x13c   :  { %392 = vsyncadd [#allocation9], 4294967040 }
 0x13d   :  { %233 = vsyncpa [#allocation3], 1 }
 0x13e   :  { %234 = vsyncpa [#allocation6], 1 }
 0x13f   :  { %235 = vsyncpa [#allocation4], 1 }
 0x140   :  { %236 = vsyncpa [#allocation9], 1 }

</bundles_post_ra>
